<compile_context>
chip_gen: v6e
topology: v6e:2x2x1
jax: 0.10.0
libtpu: 0.0.40
codegen_flags: <defaults>
</compile_context>

<pallas_src>
import math
from functools import partial

import jax
import jax.numpy as jnp
from jax import lax
from jax.experimental import pallas as pl
from jax.experimental.pallas import tpu as pltpu

_NEG_INF = -1e30                  # large finite negative: no -inf arithmetic / NaN traps
_VMEM_LIMIT = 48 * 1024 * 1024    # explicit budget; fits v7x's 64 MiB physical VMEM


def _pick_sublane_tile(n, target):
    """Largest divisor of n that is <= target and a multiple of 8, else n (full dim)."""
    if n <= target:
        return n
    for t in range(target, 7, -1):
        if n % t == 0 and t % 8 == 0:
            return t
    return n


def _pick_lane_tile(n, target):
    """Largest divisor of n that is <= target and a multiple of 128, else n (full dim)."""
    if n <= target:
        return n
    for t in range(target, 127, -1):
        if n % t == 0 and t % 128 == 0:
            return t
    return n


# --------------------------------------------------------------------------------------
# Kernel 1: QKV projection, head-friendly output layout, q pre-scaled by 1/sqrt(D)
# --------------------------------------------------------------------------------------
def _qkv_proj_kernel(x_ref, w_ref, b_ref, o_ref, acc_ref, *, D, q_scale):
    """x_ref (1, rt, kt) | w_ref (kt, 3D) | b_ref (1, 3D) | o_ref (1, 3, rt, D)
    acc_ref (rt, 3D) f32 scratch; K (contraction) tiles on the last grid axis."""
    kk = pl.program_id(2)

    @pl.when(kk == 0)
    def _init():
        acc_ref[...] = jnp.zeros_like(acc_ref)

    acc_ref[...] += jnp.dot(x_ref[0], w_ref[...], preferred_element_type=jnp.float32)

    @pl.when(kk == pl.num_programs(2) - 1)
    def _finalize():
        qkv = acc_ref[...] + b_ref[0]                                   # (rt, 3D) f32
        # planes: 0 = q (pre-scaled), 1 = k, 2 = v  — full-lane-width static stores
        o_ref[0, 0] = (qkv[:, 0 * D:1 * D] * q_scale).astype(o_ref.dtype)
        o_ref[0, 1] = qkv[:, 1 * D:2 * D].astype(o_ref.dtype)
        o_ref[0, 2] = qkv[:, 2 * D:3 * D].astype(o_ref.dtype)


# --------------------------------------------------------------------------------------
# Kernel 2: flash-style causal multi-head attention
# --------------------------------------------------------------------------------------
def _flash_attn_kernel(q_ref, k_ref, v_ref, o_ref, m_ref, l_ref, acc_ref,
                       *, H, HD, tq, tk):
    """q_ref (1,1,tq,D) | k_ref,v_ref (1,1,tk,D) | o_ref (1,tq,D)
    m_ref,l_ref (H,tq,1) f32 | acc_ref (tq,D) f32 — online softmax state per head."""
    qi = pl.program_id(1)
    ki = pl.program_id(2)
    n_k = pl.num_programs(2)

    @pl.when(ki == 0)
    def _init():
        m_ref[...] = jnp.full_like(m_ref, _NEG_INF)
        l_ref[...] = jnp.zeros_like(l_ref)
        acc_ref[...] = jnp.zeros_like(acc_ref)

    first_q = qi * tq
    last_q = first_q + (tq - 1)
    first_k = ki * tk
    last_k = first_k + (tk - 1)

    def _online_update(mask):
        """One online-softmax update for every head; mask is None or (tq, tk) bool."""
        q = q_ref[0, 0]                      # (tq, D) — q already scaled by 1/sqrt(D)
        k = k_ref[0, 0]                      # (tk, D)
        v = v_ref[0, 0]                      # (tk, D)
        for h in range(H):                   # static unroll; static lane slices
            sl = slice(h * HD, (h + 1) * HD)
            qh, kh, vh = q[:, sl], k[:, sl], v[:, sl]

            # q . k^T without an explicit transpose: contract the last dims.
            s = lax.dot_general(qh, kh, (((1,), (1,)), ((), ())),
                                preferred_element_type=jnp.float32)     # (tq, tk)
            if mask is not None:
                s = jnp.where(mask, s, _NEG_INF)

            m_prev = m_ref[h]                                           # (tq, 1)
            m_new = jnp.maximum(m_prev, jnp.max(s, axis=-1, keepdims=True))
            alpha = jnp.exp(m_prev - m_new)
            p = jnp.exp(s - m_new)                                      # f32 softmax math
            l_ref[h] = alpha * l_ref[h] + jnp.sum(p, axis=-1, keepdims=True)
            acc_ref[:, sl] = alpha * acc_ref[:, sl] + jnp.dot(
                p.astype(vh.dtype), vh, preferred_element_type=jnp.float32)
            m_ref[h] = m_new

    # Interior tiles (entirely below the diagonal): mask-free fast path.
    @pl.when(last_k <= first_q)
    def _full_tile():
        _online_update(None)

    # Diagonal / partial tiles: build the causal mask once, shared across heads.
    @pl.when(jnp.logical_and(first_k <= last_q, last_k > first_q))
    def _diag_tile():
        row = first_q + lax.broadcasted_iota(jnp.int32, (tq, tk), 0)
        col = first_k + lax.broadcasted_iota(jnp.int32, (tq, tk), 1)
        _online_update(col <= row)

    # Tiles with first_k > last_q lie entirely above the diagonal and are skipped.

    @pl.when(ki == n_k - 1)
    def _finalize():
        for h in range(H):
            sl = slice(h * HD, (h + 1) * HD)
            inv_l = pl.reciprocal(l_ref[h], approx=False)               # (tq, 1)
            # head slices contiguous along D == transpose(1,2).view(b,t,d)
            o_ref[0, :, sl] = (acc_ref[:, sl] * inv_l).astype(o_ref.dtype)


# --------------------------------------------------------------------------------------
# Wrapper
# --------------------------------------------------------------------------------------
def attention_pallas(x, w, b, num_heads, *, compute_dtype=None,
                     q_tile=128, kv_tile=128, row_tile=256, k_tile=256):
    """x: (B, T, D) | w: (D, 3D) | b: (3D,)  ->  (B, T, D)"""
    B, T, D = x.shape
    H = num_heads
    assert D % H == 0, "dim must be divisible by num_heads"
    HD = D // H
    D3 = 3 * D
    cdt = jnp.dtype(compute_dtype if compute_dtype is not None else x.dtype)

    rt = _pick_sublane_tile(T, row_tile)     # projection row tile
    kt = _pick_lane_tile(D, k_tile)          # projection contraction tile
    tq = _pick_sublane_tile(T, q_tile)       # attention query tile
    tk = _pick_sublane_tile(T, kv_tile)      # attention KV tile

    b2 = b.reshape(1, D3)
    q_scale = 1.0 / math.sqrt(float(D))      # reference scales logits by 1/sqrt(d_model)

    # ---- Kernel 1: QKV projection -> (B, 3, T, D), q pre-scaled ----
    qkv = pl.pallas_call(
        partial(_qkv_proj_kernel, D=D, q_scale=q_scale),
        out_shape=jax.ShapeDtypeStruct((B, 3, T, D), cdt),
        grid_spec=pltpu.PrefetchScalarGridSpec(
            num_scalar_prefetch=0,
            grid=(B, T // rt, D // kt),
            in_specs=[
                pl.BlockSpec((1, rt, kt), lambda bi, ri, ki: (bi, ri, ki)),   # x
                pl.BlockSpec((kt, D3),    lambda bi, ri, ki: (ki, 0)),        # W
                pl.BlockSpec((1, D3),     lambda bi, ri, ki: (0, 0)),         # bias
            ],
            out_specs=pl.BlockSpec((1, 3, rt, D), lambda bi, ri, ki: (bi, 0, ri, 0)),
            scratch_shapes=[pltpu.VMEM((rt, D3), jnp.float32)],
        ),
        compiler_params=pltpu.CompilerParams(
            dimension_semantics=("parallel", "parallel", "arbitrary"),
            vmem_limit_bytes=_VMEM_LIMIT,
        ),
        cost_estimate=pl.CostEstimate(
            flops=2 * B * T * D * D3,
            transcendentals=0,
            bytes_accessed=int(x.nbytes + w.nbytes + b.nbytes + B * 3 * T * D * cdt.itemsize),
        ),
    )(x, w, b2)

    # ---- Kernel 2: flash-style causal attention -> (B, T, D) ----
    out = pl.pallas_call(
        partial(_flash_attn_kernel, H=H, HD=HD, tq=tq, tk=tk),
        out_shape=jax.ShapeDtypeStruct((B, T, D), x.dtype),
        grid_spec=pltpu.PrefetchScalarGridSpec(
            num_scalar_prefetch=0,
            grid=(B, T // tq, T // tk),
            in_specs=[
                pl.BlockSpec((1, 1, tq, D), lambda bi, qi, ki: (bi, 0, qi, 0)),  # q plane
                pl.BlockSpec((1, 1, tk, D), lambda bi, qi, ki: (bi, 1, ki, 0)),  # k plane
                pl.BlockSpec((1, 1, tk, D), lambda bi, qi, ki: (bi, 2, ki, 0)),  # v plane
            ],
            out_specs=pl.BlockSpec((1, tq, D), lambda bi, qi, ki: (bi, qi, 0)),
            scratch_shapes=[
                pltpu.VMEM((H, tq, 1), jnp.float32),   # running max  m
                pltpu.VMEM((H, tq, 1), jnp.float32),   # running sum  l
                pltpu.VMEM((tq, D), jnp.float32),      # unnormalized accumulator
            ],
        ),
        compiler_params=pltpu.CompilerParams(
            dimension_semantics=("parallel", "parallel", "arbitrary"),
            vmem_limit_bytes=_VMEM_LIMIT,
        ),
        cost_estimate=pl.CostEstimate(
            flops=2 * B * T * T * D,                   # ~causal half of 2 matmuls
            transcendentals=(B * H * T * T) // 2,
            bytes_accessed=int(B * 3 * T * D * cdt.itemsize + B * T * D * x.dtype.itemsize),
        ),
    )(qkv, qkv, qkv)

    return out


# --------------------------------------------------------------------------------------
# Plain-JAX reference (mirrors the PyTorch forward) + test
# --------------------------------------------------------------------------------------
def attention_reference(x, w, b, num_heads):
    B, T, D = x.shape
    HD = D // num_heads
    qkv = x @ w + b
    q, k, v = jnp.split(qkv, 3, axis=-1)

    def heads(z):
        return z.reshape(B, T, num_heads, HD).transpose(0, 2, 1, 3)

    q, k, v = heads(q), heads(k), heads(v)
    logits = jnp.einsum("bhtd,bhsd->bhts", q, k) / math.sqrt(D)
    mask = jnp.tril(jnp.ones((T, T), dtype=bool))
    logits = jnp.where(mask, logits, -jnp.inf)
    attn = jax.nn.softmax(logits, axis=-1)
    out = jnp.einsum("bhts,bhsd->bhtd", attn, v)
    return out.transpose(0, 2, 1, 3).reshape(B, T, D)


def _run_case(B, T, D, H, seed_key):
    kx, kw, kb = jax.random.split(seed_key, 3)
    x = jax.random.normal(kx, (B, T, D), dtype=jnp.float32)
    bound = 1.0 / math.sqrt(D)
    w = jax.random.uniform(kw, (D, 3 * D), jnp.float32, -bound, bound)
    b = jax.random.uniform(kb, (3 * D,), jnp.float32, -bound, bound)

    out = jax.block_until_ready(attention_pallas(x, w, b, H))
    ref = attention_reference(x, w, b, H)
    assert out.shape == (B, T, D)
    assert jnp.allclose(out, ref, atol=1e-4, rtol=1e-4), \
        f"mismatch vs reference for (B,T,D,H)=({B},{T},{D},{H})"


if __name__ == "__main__":
    root = jax.random.PRNGKey(0)

    # small shape matching the module's intended use (batch=2, seq=8, hidden=32, heads=4)
    _run_case(2, 8, 32, 4, jax.random.fold_in(root, 0))
    # multi-tile case: exercises KV tiling, online softmax, mask-free interior tiles,
    # masked diagonal tiles, and causal tile skipping
    _run_case(1, 256, 128, 2, jax.random.fold_in(root, 1))

    print("KERNEL_OK")
</pallas_src>

<mosaic_0001>
module attributes {stable_mosaic.version = 11 : i64} {
  func.func @_qkv_proj_kernel(%arg0: i32, %arg1: i32, %arg2: i32, %arg3: memref<1x8x32xf32, #tpu.memory_space<vmem>>, %arg4: memref<32x96xf32, #tpu.memory_space<vmem>>, %arg5: memref<1x96xf32, #tpu.memory_space<vmem>>, %arg6: memref<1x3x8x32xf32, #tpu.memory_space<vmem>>, %arg7: memref<8x96xf32, #tpu.memory_space<vmem>>) attributes {dimension_semantics = [#tpu.dimension_semantics<parallel>, #tpu.dimension_semantics<parallel>, #tpu.dimension_semantics<arbitrary>], iteration_bounds = array<i64: 2, 1, 1>, scalar_prefetch = 0 : i64, scratch_operands = 1 : i64, tpu.core_type = #tpu.core_type<tc>, window_params = [{transform_indices = @transform_0, window_bounds = array<i64: 1, 8, 32>}, {transform_indices = @transform_1, window_bounds = array<i64: 32, 96>}, {pipeline_mode = #tpu.pipeline_mode<synchronous>, transform_indices = @transform_2, window_bounds = array<i64: 1, 96>}, {transform_indices = @transform_3, window_bounds = array<i64: 1, 3, 8, 32>}]} {
    %c0_i32 = arith.constant 0 : i32
    %0 = arith.cmpi eq, %arg2, %c0_i32 : i32
    %1 = arith.extui %0 : i1 to i32
    %c0_i32_0 = arith.constant 0 : i32
    %2 = arith.cmpi ne, %1, %c0_i32_0 : i32
    scf.if %2 {
      %cst_11 = arith.constant 0.000000e+00 : f32
      %13 = vector.broadcast %cst_11 : f32 to vector<8x96xf32>
      %c0_12 = arith.constant 0 : index
      %c0_13 = arith.constant 0 : index
      %14 = vector.load %arg7[%c0_12, %c0_13] : memref<8x96xf32, #tpu.memory_space<vmem>>, vector<8x96xf32>
      tpu.vector_store %arg7[%c0_12, %c0_13], %13 {strides = array<i32>} : memref<8x96xf32, #tpu.memory_space<vmem>>, vector<8x96xf32>,
    } else {
    }
    %c0 = arith.constant 0 : index
    %c0_1 = arith.constant 0 : index
    %3 = vector.load %arg7[%c0, %c0_1] : memref<8x96xf32, #tpu.memory_space<vmem>>, vector<8x96xf32>
    %c0_2 = arith.constant 0 : index
    %c0_3 = arith.constant 0 : index
    %c0_4 = arith.constant 0 : index
    %4 = vector.load %arg3[%c0_2, %c0_3, %c0_4] : memref<1x8x32xf32, #tpu.memory_space<vmem>>, vector<1x8x32xf32>
    %5 = vector.shape_cast %4 : vector<1x8x32xf32> to vector<8x32xf32>
    %c0_5 = arith.constant 0 : index
    %c0_6 = arith.constant 0 : index
    %6 = vector.load %arg4[%c0_5, %c0_6] : memref<32x96xf32, #tpu.memory_space<vmem>>, vector<32x96xf32>
    %cst = arith.constant dense<0.000000e+00> : vector<8x96xf32>
    %7 = tpu.matmul %5, %6, %cst {dimension_numbers = #tpu.dot_dimension_numbers<[1], [0], [0], [1], [0, 0, 1, 1], [], []>} : vector<8x32xf32>, vector<32x96xf32>, vector<8x96xf32> -> vector<8x96xf32>
    %8 = arith.addf %3, %7 : vector<8x96xf32>
    %c0_7 = arith.constant 0 : index
    %c0_8 = arith.constant 0 : index
    %9 = vector.load %arg7[%c0_7, %c0_8] : memref<8x96xf32, #tpu.memory_space<vmem>>, vector<8x96xf32>
    tpu.vector_store %arg7[%c0_7, %c0_8], %8 {strides = array<i32>} : memref<8x96xf32, #tpu.memory_space<vmem>>, vector<8x96xf32>,
    %c0_i32_9 = arith.constant 0 : i32
    %10 = arith.cmpi eq, %arg2, %c0_i32_9 : i32
    %11 = arith.extui %10 : i1 to i32
    %c0_i32_10 = arith.constant 0 : i32
    %12 = arith.cmpi ne, %11, %c0_i32_10 : i32
    scf.if %12 {
      %c0_11 = arith.constant 0 : index
      %c0_12 = arith.constant 0 : index
      %13 = vector.load %arg7[%c0_11, %c0_12] : memref<8x96xf32, #tpu.memory_space<vmem>>, vector<8x96xf32>
      %c0_13 = arith.constant 0 : index
      %c0_14 = arith.constant 0 : index
      %14 = vector.load %arg5[%c0_13, %c0_14] : memref<1x96xf32, #tpu.memory_space<vmem>>, vector<1x96xf32>
      %15 = vector.shape_cast %14 : vector<1x96xf32> to vector<96xf32>
      %16 = vector.shape_cast %15 : vector<96xf32> to vector<1x96xf32>
      %17 = vector.broadcast %16 : vector<1x96xf32> to vector<8x96xf32>
      %18 = arith.addf %13, %17 : vector<8x96xf32>
      %19 = vector.extract_strided_slice %18 {offsets = [0, 0], sizes = [8, 32], strides = [1, 1]} : vector<8x96xf32> to vector<8x32xf32>
      %cst_15 = arith.constant 0.176776692 : f32
      %20 = vector.broadcast %cst_15 : f32 to vector<8x32xf32>
      %21 = arith.mulf %19, %20 : vector<8x32xf32>
      %c0_16 = arith.constant 0 : index
      %c0_17 = arith.constant 0 : index
      %c0_18 = arith.constant 0 : index
      %c0_19 = arith.constant 0 : index
      %22 = vector.load %arg6[%c0_16, %c0_17, %c0_18, %c0_19] : memref<1x3x8x32xf32, #tpu.memory_space<vmem>>, vector<1x1x8x32xf32>
      %23 = vector.shape_cast %22 : vector<1x1x8x32xf32> to vector<8x32xf32>
      %24 = vector.shape_cast %21 : vector<8x32xf32> to vector<1x1x8x32xf32>
      tpu.vector_store %arg6[%c0_16, %c0_17, %c0_18, %c0_19], %24 {strides = array<i32>} : memref<1x3x8x32xf32, #tpu.memory_space<vmem>>, vector<1x1x8x32xf32>,
      %25 = vector.extract_strided_slice %18 {offsets = [0, 32], sizes = [8, 32], strides = [1, 1]} : vector<8x96xf32> to vector<8x32xf32>
      %c0_20 = arith.constant 0 : index
      %c1 = arith.constant 1 : index
      %c0_21 = arith.constant 0 : index
      %c0_22 = arith.constant 0 : index
      %26 = vector.load %arg6[%c0_20, %c1, %c0_21, %c0_22] : memref<1x3x8x32xf32, #tpu.memory_space<vmem>>, vector<1x1x8x32xf32>
      %27 = vector.shape_cast %26 : vector<1x1x8x32xf32> to vector<8x32xf32>
      %28 = vector.shape_cast %25 : vector<8x32xf32> to vector<1x1x8x32xf32>
      tpu.vector_store %arg6[%c0_20, %c1, %c0_21, %c0_22], %28 {strides = array<i32>} : memref<1x3x8x32xf32, #tpu.memory_space<vmem>>, vector<1x1x8x32xf32>,
      %29 = vector.extract_strided_slice %18 {offsets = [0, 64], sizes = [8, 32], strides = [1, 1]} : vector<8x96xf32> to vector<8x32xf32>
      %c0_23 = arith.constant 0 : index
      %c2 = arith.constant 2 : index
      %c0_24 = arith.constant 0 : index
      %c0_25 = arith.constant 0 : index
      %30 = vector.load %arg6[%c0_23, %c2, %c0_24, %c0_25] : memref<1x3x8x32xf32, #tpu.memory_space<vmem>>, vector<1x1x8x32xf32>
      %31 = vector.shape_cast %30 : vector<1x1x8x32xf32> to vector<8x32xf32>
      %32 = vector.shape_cast %29 : vector<8x32xf32> to vector<1x1x8x32xf32>
      tpu.vector_store %arg6[%c0_23, %c2, %c0_24, %c0_25], %32 {strides = array<i32>} : memref<1x3x8x32xf32, #tpu.memory_space<vmem>>, vector<1x1x8x32xf32>,
    } else {
    }
    return
  }
  func.func @transform_0(%arg0: i32, %arg1: i32, %arg2: i32) -> (i32, i32, i32) {
    %c0_i32 = arith.constant 0 : i32
    return %arg0, %arg1, %arg2 : i32, i32, i32
  }
  func.func @transform_1(%arg0: i32, %arg1: i32, %arg2: i32) -> (i32, i32) {
    %c0_i32 = arith.constant 0 : i32
    %c0_i32_0 = arith.constant 0 : i32
    return %arg2, %c0_i32 : i32, i32
  }
  func.func @transform_2(%arg0: i32, %arg1: i32, %arg2: i32) -> (i32, i32) {
    %c0_i32 = arith.constant 0 : i32
    %c0_i32_0 = arith.constant 0 : i32
    %c0_i32_1 = arith.constant 0 : i32
    return %c0_i32, %c0_i32_0 : i32, i32
  }
  func.func @transform_3(%arg0: i32, %arg1: i32, %arg2: i32) -> (i32, i32, i32, i32) {
    %c0_i32 = arith.constant 0 : i32
    %c0_i32_0 = arith.constant 0 : i32
    %c0_i32_1 = arith.constant 0 : i32
    return %arg0, %c0_i32, %arg1, %c0_i32_0 : i32, i32, i32, i32
  }
}

</mosaic_0001>

<bundles_post_ra>
// kernel: tpu_custom_call.1
= control target key start
LH: loop header
LB: loop body
LE: loop exit
PB: predicated region body
PF: predicated region fallthrough
CT: control target
= control target key end

     0   :  { %8 = vsyncpa [#allocation4], 0  ;;  %s944_s0 = inlined_call_operand.hbm [shape: f32[2,8,32], index: 0, kind: input, shape index: {}]   ;;  %s945_s1 = inlined_call_operand.hbm [shape: f32[32,96], index: 1, kind: input, shape index: {}]   ;;  %s946_s2 = inlined_call_operand.vmem [shape: f32[1,96], index: 2, kind: input, shape index: {}]   ;;  %s947_s3 = inlined_call_operand.hbm [shape: f32[2,3,8,32], index: 3, kind: output, shape index: {}]  }
   0x1   :  { %10 = vsyncpa [#allocation4 + $0x1], 0 }
   0x2   :  { %11 = vsyncpa [#allocation7], 0 }
   0x3   :  { %12 = vsyncpa [#allocation5], 0 }
   0x4   :  { %14 = vsyncpa [#allocation5 + $0x1], 0  ;;  %s753_s12 = smov 0   ;;  %s755_s13 = smov 0  }
   0x5   :  { %s757_s14 = smov 0   ;;  %s759_s15 = smov 0  }
   0x6   :  { %s761_s16 = smov 0   ;;  %s763_s17 = smov 0  }
   0x7 LB: > { %s466_s18 = sadd.s32 4294967295, %s720_s17   ;;  %s467_s19 = sadd.s32 4294967294, %s720_s17   ;;  %s720_s17 = sphi %s763_s17, %s20_s17   ;;  %s716_s16 = sphi %s761_s16, %s965_s16   ;;  %s712_s15 = sphi %s759_s15, %s964_s15   ;;  %s708_s14 = sphi %s757_s14, %s963_s14   ;;  %s704_s13 = sphi %s755_s13, %s962_s13   ;;  %s700_s12 = sphi %s753_s12, %s961_s12  }
   0x8   : > { %p63_p0 = scmp.ne.s32.totalorder %s704_s13, %s700_s12  ;;  %p787_p1 = scmp.eq.s32.totalorder %s466_s18, 0 }
   0x9   : > { %p791_p2 = scmp.eq.s32.totalorder %s466_s18, 1  ;;  %p142_p3 = scmp.eq.s32.totalorder %s467_s19, 1 }
   0xa   : > { %p797_p4 = por %p787_p1, %p63_p0  ;;  %p468_p5 = scmp.ge.s32.totalorder %s720_s17, 1 }
   0xb   : > { %p802_p6 = por %p142_p3, %p63_p0  ;;  %p149_p7 = scmp.lt.s32.totalorder %s720_s17, 3 }
   0xc   : > { %s951_s22 = scalar_select %p797_p4, 1, 0 }
   0xd   : > { %s952_s23 = scalar_select %p802_p6, 1, 0 }
   0xe   : > { %p807_p8 = pnand %p468_p5, %p149_p7  ;;  %s722_s25 = smov [#allocation6]  }
   0xf   : > { %s164_s26 = sshll.u32 %s722_s25, 4  ;;  %s39_s28 = sadd.s32 1, %s716_s16  ;;  %s165_s26 = int_to_ptr.vmem [resolvable:$true] %s164_s26 }
  0x10   : > { %p509_p9 = pneg %p807_p8  ;;  %s593_s29 = scalar_lea.vmem %s165_s26, 512 }
  0x11   : > { %p594_p13 = scmp.ne.s32.totalorder %s165_s26, %s593_s29  ;;  %p601_p5 = scmp.lt.s32.totalorder %s165_s26, %s165_s26 }
  0x12   : > { %p816_p11 = pnand %p509_p9, %p787_p1  ;;  %p602_p7 = scmp.lt.s32.totalorder %s593_s29, %s593_s29 }
  0x14   : > { %p584_p12 = pneg %p816_p11  ;;  %p603_p6 = por %p602_p7, %p601_p5 }
  0x16   : > { %p596_p0 = pnand %p594_p13, %p584_p12 }
  0x18   : > { %p597_p3 = pneg %p596_p0 }
  0x1a   : > { %p604_p4 = pnand %p603_p6, %p597_p3 }
  0x1c   : > { %607 = shalt.err (!%p604_p4)
}
  0x1d   : > { %s723_s30 = smov 128   ;;  %s724_s4 = smov 8  }
  0x1e   : > { %512 = dma.hbm_to_vmem [thread:$0]  (!%p816_p11), %s945_s1, 512, %s165_s26, [#allocation7], %s723_s30, %s723_s30, %s724_s4  }
  0x1f   : > { %p41_p6 = scmp.ge.s32.totalorder %s39_s28, 2  ;;  %s50_s7 = sadd.s32 1, %s708_s14 }
  0x20   : > { %p57_p4 = scmp.ne.s32.totalorder %s708_s14, %s704_s13  ;;  %p58_p9 = scmp.eq.s32.totalorder %s720_s17, 0 }
  0x21   : > { %s967_s28 = smov (%p41_p6, %s39_s28), 0  ;;  %p522_p0 = scmp.lt.s32.totalorder %s720_s17, 2 }
  0x22   : > { %p834_p12 = por %p58_p9, %p57_p4  ;;  %p840_p13 = por %p791_p2, %p57_p4 }
  0x23   : > { %s43_s10 = ssub.s32 %s716_s16, %s967_s28  ;;  %s181_s11 = sand.u32 1, %s708_s14  }
  0x24   : > { %p48_p11 = scmp.eq.s32.totalorder %s43_s10, 0  ;;  %s471_s18 = sshll.u32 %s181_s11, 3 }
  0x25   : > { %s472_s25 = sshll.u32 %s716_s16, 7  ;;  %s185_s30 = scalar_lea.vmem [#allocation3], %s471_s18 }
  0x26   : > { %s849_s19 = scalar_select %p48_p11, %s708_s14, %s50_s7  }
  0x27   : > { %s192_s29 = scalar_lea.hbm %s944_s0, %s472_s25  ;;  %s194_s4 = sshll.u32 %s185_s30, 4  ;;  %s195_s4 = int_to_ptr.vmem [resolvable:$true] %s194_s4 }
  0x28   : > { %p857_p2 = pnand %p522_p0, %p834_p12  ;;  %s182_s5 = scalar_lea.sflag [#allocation4], %s181_s11 }
  0x29   : > { %s621_s6 = scalar_lea.vmem %s195_s4, 128  ;;  %s725_s7 = smov [#allocation3]  }
  0x2a   : > { %p610_p3 = pneg %p857_p2  ;;  %p622_p5 = scmp.ne.s32.totalorder %s195_s4, %s621_s6 }
  0x2b   : > { %s626_s10 = sshll.u32 %s725_s7, 4  ;;  %s627_s10 = int_to_ptr.vmem [resolvable:$false] %s626_s10 }
  0x2c   : > { %p624_p7 = pnand %p622_p5, %p610_p3  ;;  %s628_s25 = scalar_lea.vmem %s627_s10, 256 }
  0x2d   : > { %p629_p4 = scmp.lt.s32.totalorder %s195_s4, %s627_s10  ;;  %p630_p9 = scmp.lt.s32.totalorder %s628_s25, %s621_s6 }
  0x2e   : > { %p625_p6 = pneg %p624_p7 }
  0x2f   : > { %p631_p11 = por %p630_p9, %p629_p4 }
  0x31   : > { %p632_p10 = pnand %p631_p11, %p625_p6 }
  0x33   : > { %635 = shalt.err (!%p632_p10)
}
  0x34   : > { %516 = dma.hbm_to_vmem [thread:$0]  (!%p857_p2), %s192_s29, 128, %s195_s4, %s182_s5  }
  0x35   : > { %203 = sbr.rel (%p807_p8) target bundleno = 408 (0x198), region = 32  ;;  %s868_s8 = sand.u32 (!%p807_p8), 1, %s704_s13  }
  0x36   : > { %s474_s11 = sshll.u32 (!%p807_p8), %s868_s8, 3  ;;  %s206_s18 = scalar_lea.sflag (!%p807_p8), [#allocation4], %s868_s8 }
  0x37   : > { %s209_s26 = scalar_lea.vmem (!%p807_p8), [#allocation3], %s474_s11  ;;  %p958_p12 = scmp.ne.s32.totalorder (!%p807_p8), %s951_s22, 0 }
  0x3a   : > { %687 = dma.done.wait (%p958_p12), %s206_s18, 128  }
  0x3b   : > { %689 = vsyncadd (%p958_p12), %s206_s18, 4294967168 }
  0x3c   : > { %691 = dma.done.wait (%p787_p1), [#allocation7], 512  }
  0x3d   : > { %693 = vsyncadd (%p787_p1), [#allocation7], 4294966784  ;;  %vm241_vm0 = vcmask 785408   ;;  %v726_v0 = vmov 0.0   ;;  %vm727_vm1 = vmmov 0   ;;  %v248_v1 = vld [vmem:[#allocation6 + $0x18] sm:$0xff] }
  0x3e   : > { %488 = vmatprep.subr.mxu0 %v726_v0  ;;  %496 = vmatprep.mubr.msk.f32.mxu0 %vm727_vm1, %v726_v0  ;;  %242 = vst.msk [vmem:[#allocation2] sm:$0xff] %vm241_vm0, %v726_v0  ;;  %v247_v2 = vld [vmem:[#allocation6 + $0x10] sm:$0xff]  ;;  %v246_v3 = vld [vmem:[#allocation6 + $0x8] sm:$0xff]  ;;  %v245_v4 = vld [vmem:[#allocation6] sm:$0xff]  ;;  %vm249_vm2 = vcmask 261120   ;;  %s499_s24 = smul.u32 24, %s868_s8 }
  0x3f   : > { %489 = vmatpush3.msra.mxu0 %v248_v1  ;;  %v244_v5 = vld [vmem:[%s209_s26] sm:$0xff]  ;;  %v477_v10 = vld [vmem:[%s946_s2] ss:$0 sm:$0xff]  ;;  %s728_s27 = smov 96   ;;  %s729_s30 = smov 64  }
  0x40   : > { %490 = vmatprep.subr.mxu0 %v726_v0  ;;  %s235_s29 = scalar_lea.vmem [#allocation8], %s499_s24  ;;  %s500_s21 = smul.u32 384, %s712_s15 }
  0x41   : > { %491 = vmatpush3.msra.mxu0 %v247_v2  ;;  %s366_s4 = sshll.u32 %s235_s29, 4  ;;  %s352_s10 = scalar_lea.sflag [#allocation5], %s868_s8  ;;  %s889_s4 = int_to_ptr.vmem [resolvable:$true] %s366_s4 }
  0x42   : > { %492 = vmatprep.subr.mxu0 %v726_v0  ;;  %s895_s7 = scalar_lea.hbm %s947_s3, %s500_s21  ;;  %s636_s25 = scalar_lea.vmem %s889_s4, 384 }
  0x43   : > { %493 = vmatpush3.msra.mxu0 %v246_v3  ;;  %p637_p1 = scmp.ne.s32.totalorder %s889_s4, %s636_s25  ;;  %s730_s15 = smov [#allocation8]  }
  0x44   : > { %494 = vmatprep.subr.mxu0 %v726_v0  ;;  %s640_s11 = sshll.u32 %s730_s15, 4  ;;  %s641_s11 = int_to_ptr.vmem [resolvable:$false] %s640_s11 }
  0x45   : > { %495 = vmatpush3.msra.mxu0 %v245_v4  ;;  %v243_v6 = vld [vmem:[#allocation2] sm:$0xff]  ;;  %p638_p8 = pnand %p637_p1, %p840_p13  ;;  %s642_s18 = scalar_lea.vmem %s641_s11, 768 }
  0x46   : > { %497 = vmatmul.mubr.msk.f32.vlgmr.msra.gmra.mxu0 %vm249_vm2, %v244_v5  ;;  %p643_p0 = scmp.lt.s32.totalorder %s889_s4, %s641_s11  ;;  %p644_p2 = scmp.lt.s32.totalorder %s642_s18, %s636_s25 }
  0x47   : > { %p639_p10 = pneg %p638_p8 }
  0x48   : > { %p645_p3 = por %p644_p2, %p643_p0 }
  0x4a   : > { %p646_p5 = pnand %p645_p3, %p639_p10 }
 0x106   : > { %v319_v7 = vpop.f32.mrf.mxu0 }
 0x107   : > { %v323_v8 = vadd.f32 %v319_v7, %v243_v6 }
 0x108   : > { %v498_v9 = vpop.f32.mrf.mxu0 }
 0x109   : > { %325 = vst.msk [vmem:[#allocation2] sm:$0xff] %vm241_vm0, %v323_v8 }
 0x110   : > { %v329_v11 = vld [vmem:[#allocation2] sm:$0xff] }
 0x111   : > { %v337_v12 = vadd.f32 %v477_v10, %v329_v11 }
 0x113   : > { %341 = vrot.lane.b32.xlu0 %v337_v12, %s728_s27  ;;  %v338_v13 = vmul.f32 0.17677669, %v337_v12 }
 0x115   : > { %339 = vst.msk [vmem:[%s235_s29] sm:$0xff] %vm249_vm2, %v338_v13 }
 0x117   : > { %346 = vrot.lane.b32.xlu0 %v337_v12, %s729_s30 }
 0x185   : > { %v342_v14 = vpop.permute.xlu0 %341 }
 0x186   : > { %478 = vst.msk [vmem:[%s235_s29 + $0x8] sm:$0xff] %vm249_vm2, %v342_v14 }
 0x189   : > { %v347_v15 = vpop.permute.xlu0 %346 }
 0x18a   : > { %479 = vst.msk [vmem:[%s235_s29 + $0x10] sm:$0xff] %vm249_vm2, %v347_v15 }
 0x18b   : > { %649 = shalt.err (!%p646_p5)
}
 0x18c   : > { %s650_s26 = scalar_lea.hbm %s895_s7, 384  ;;  %s654_s24 = scalar_lea.hbm %s947_s3, 768 }
 0x18d   : > { %p651_p7 = scmp.ne.s32.totalorder %s895_s7, %s650_s26  ;;  %p655_p9 = scmp.lt.s32.totalorder %s895_s7, %s947_s3 }
 0x18e   : > { %p656_p11 = scmp.lt.s32.totalorder %s654_s24, %s650_s26 }
 0x18f   : > { %p652_p6 = pnand %p651_p7, %p840_p13 }
 0x190   : > { %p657_p12 = por %p656_p11, %p655_p9 }
 0x191   : > { %p653_p4 = pneg %p652_p6 }
 0x193   : > { %p658_p1 = pnand %p657_p12, %p653_p4 }
 0x195   : > { %661 = shalt.err (!%p658_p1)
}
 0x196   : > { %s731_s30 = smov 128   ;;  %s732_s21 = smov 8  }
 0x197   : > { %507 = dma.vmem_to_hbm [thread:$0]  (%p840_p13), %s889_s4, 384, %s895_s7, %s352_s10, %s731_s30, %s731_s30, %s732_s21  }
 0x198 PF: > { %s381_s5 = sand.u32 1, %s700_s12   ;;  %p959_p8 = scmp.ne.s32.totalorder %s952_s23, 0 }
 0x199   : > { %p960_p10 = scmp.ge.s32.totalorder %s720_s17, 2  ;;  %s382_s6 = scalar_lea.sflag [#allocation5], %s381_s5 }
 0x19b   : > { %p518_p0 = pnand %p960_p10, %p959_p8 }
 0x19d   : > { %p519_p2 = pneg %p518_p0 }
 0x19f   : > { %695 = dma.done.wait (%p519_p2), %s382_s6, 384  }
 0x1a0   : > { %697 = vsyncadd (%p519_p2), %s382_s6, 4294966912  ;;  %s20_s17 = sadd.s32 1, %s720_s17   ;;  %s961_s12 = smov %s704_s13 }
 0x1a1   : > { %p17_p3 = scmp.ge.s32.totalorder %s20_s17, 4   ;;  %s962_s13 = smov %s708_s14 }
 0x1a2   : > { %s963_s14 = smov %s849_s19  ;;  %s964_s15 = smov %s716_s16 }
 0x1a3   : > { %s965_s16 = smov %s967_s28  ;;  %19 = sbr.rel (!%p17_p3) target bundleno = 7 (0x7), region = 92 }
 0x1a8   :  { %387 = vsyncpa [#allocation4], 1 }
 0x1a9   :  { %389 = vsyncpa [#allocation4 + $0x1], 1 }
 0x1aa   :  { %390 = vsyncpa [#allocation7], 1 }
 0x1ab   :  { %391 = vsyncpa [#allocation5], 1 }
 0x1ac   :  { %393 = vsyncpa [#allocation5 + $0x1], 1 }

</bundles_post_ra>
